<compile_context>
chip_gen: v6e
topology: v6e:2x2x1
jax: 0.10.0
libtpu: 0.0.40
codegen_flags: <defaults>
</compile_context>

<pallas_src>
import math

import jax
import jax.numpy as jnp
from jax import lax
from jax.experimental import pallas as pl
from jax.experimental.pallas import tpu as pltpu

# ----------------------------- small config ---------------------------------
B = 2            # batch
S = 8            # seq_len
D = 32           # d_model
H = 4            # num_heads
HD = 16          # head_dim
RD = 8           # rope_head_dim
RD2 = RD // 2
ND = HD - RD     # nope_head_dim
QLR = 16         # q_lora_rank
KVLR = 8         # kv_lora_rank
HS = H * S       # head-stacked attention rows
EPS = 1e-6       # RMSNorm eps (assumed to match the reference RMSNorm)
NEG = -1e30      # additive mask value (exp underflows to exactly 0.0 in f32)


# ------------------------------- kernel -------------------------------------
def mla_kernel(x_ref, win_ref, gq_ref, gkv_ref, wqd_ref, wkvd_ref, wo_ref,
               ct_ref, st_ref, bias_ref, o_ref):
    f32, bf16 = jnp.float32, jnp.bfloat16

    def mm(a, b):                      # bf16 MXU operands, f32 accumulation
        return jnp.dot(a.astype(bf16), b.astype(bf16), preferred_element_type=f32)

    def mm_nt(a, b):                   # a @ b.T without materializing a transpose
        return lax.dot_general(a.astype(bf16), b.astype(bf16),
                               (((1,), (1,)), ((), ())), preferred_element_type=f32)

    def rms(v, g):                     # f32 VPU math (v5e has no bf16 VPU path)
        return v * lax.rsqrt(jnp.mean(v * v, axis=-1, keepdims=True) + EPS) * g

    def rope(v, ct, st):               # rotate-half on de-interleaved [even | odd] cols
        e, o = v[:, :RD2], v[:, RD2:]
        return jnp.concatenate([e * ct - o * st, o * ct + e * st], axis=-1)

    ct_big = ct_ref[...]               # (HS, RD2) cos, tiled over heads along rows
    st_big = st_ref[...]               # (HS, RD2) sin

    x = x_ref[...]                     # (S, D), this batch's rows

    # One fused input projection: [compress_q | compress_kv | k_rope].
    xc = mm(x, win_ref[...])                           # (S, QLR + KVLR + RD)
    scale = 1.0 / math.sqrt(HD)
    nq = rms(xc[:, :QLR], gq_ref[...]) * scale         # fold 1/sqrt(HD) once (linear)
    nkv = rms(xc[:, QLR:QLR + KVLR], gkv_ref[...])
    kr = rope(xc[:, QLR + KVLR:], ct_big[:S], st_big[:S])   # shared rotated k_rope (S, RD)

    # Fused decompressions.
    qdec = mm(nq, wqd_ref[...])                        # (S, H*ND + H*RD)
    q_nope, q_rope = qdec[:, :H * ND], qdec[:, H * ND:]
    kvdec = mm(nkv, wkvd_ref[...])                     # (S, H*ND + H*HD)
    k_nope, v_all = kvdec[:, :H * ND], kvdec[:, H * ND:]

    # ---- Batched attention core: stack the H heads along rows (row = h*S + s), so
    # the whole attention is ONE score matmul + ONE softmax + ONE PV matmul.
    def stack(t, c):                   # (S, H*c) head-major columns -> (H*S, c)
        return jnp.concatenate([t[:, h * c:(h + 1) * c] for h in range(H)], axis=0)

    qn_big = stack(q_nope, ND)                             # (HS, ND)
    kn_big = stack(k_nope, ND)                             # (HS, ND)
    v_big = stack(v_all, HD)                               # (HS, HD)
    qr_big = rope(stack(q_rope, RD), ct_big, st_big)       # all-head q-rope, ONE rope call
    kr_big = jnp.concatenate([kr] * H, axis=0)             # shared k_rope broadcast over heads

    # Reference swap (`k_rope, q_rope = apply_rope(query_rope, key_rope, ...)`):
    # Q carries the rotated shared key-rope, K carries the rotated per-head q-rope.
    q_big = jnp.concatenate([qn_big, kr_big], axis=-1)     # (HS, HD)
    k_big = jnp.concatenate([kn_big, qr_big], axis=-1)     # (HS, HD)

    # Single score matmul; bias is the precomputed block-diagonal causal mask
    # (0 on valid, -1e30 elsewhere), so no in-kernel iota/divide is needed.
    s = mm_nt(q_big, k_big) + bias_ref[...]                # (HS, HS), already scaled
    m = jnp.max(s, axis=-1, keepdims=True)
    p = jnp.exp(s - m)
    p = p * pl.reciprocal(jnp.sum(p, axis=-1, keepdims=True), approx=True)
    o_big = mm(p, v_big)                                   # (HS, HD); cross-head terms are exactly 0

    # Un-stack heads -> (S, H*HD), then ONE output projection.
    o_all = jnp.concatenate([o_big[h * S:(h + 1) * S, :] for h in range(H)], axis=-1)
    out = mm(o_all, wo_ref[...])                           # (S, D) f32

    # Lane-dense store: flatten (S, D) -> (1, S*D) with row-slices + lane concat
    # (no Mosaic reshape), so the store is a full-lane vst, not a masked 32-lane one.
    o_ref[...] = jnp.concatenate([out[r:r + 1, :] for r in range(S)],
                                 axis=-1).astype(o_ref.dtype)


# ------------------------- one-time layout preparation -----------------------
def prepare_mla_inputs(params, cos2, sin2):
    """One-time prep (hoisted out of the per-call path): fused bf16 weight slabs,
    de-interleaved rope weight columns, head-tiled cos/sin, block-diag causal bias."""
    bf16 = jnp.bfloat16
    # De-interleave rope weight columns (evens first, odds second) so the in-kernel
    # RoPE is a contiguous rotate-half; scores are invariant to this consistent
    # permutation of both rope operands.
    deint = jnp.concatenate([jnp.arange(0, RD, 2), jnp.arange(1, RD, 2)])
    wqr_d = params["wqr"].reshape(QLR, H, RD)[:, :, deint].reshape(QLR, H * RD)
    wkr_d = params["wkr"][:, deint]

    # Fused weight slabs, cast to bf16 ONCE (halves weight DMA, no in-kernel casts).
    # TODO(synk): at production sizes pad slab widths toward multiples of 128/256
    # lanes for the v6e/v7x MXU; at this toy size the 32/64/96-wide slabs are fine.
    w_in = jnp.concatenate([params["wqc"], params["wkvc"], wkr_d], axis=1).astype(bf16)
    w_qdec = jnp.concatenate([params["wqn"], wqr_d], axis=1).astype(bf16)
    w_kvdec = jnp.concatenate([params["wkn"], params["wv"]], axis=1).astype(bf16)
    wo = params["wo"].astype(bf16)

    # cos/sin per head-stacked row (row = h*S + s); kept f32 so RoPE stays on the
    # f32 VPU path (v5e has no bf16 VPU).
    ct = jnp.tile(cos2.astype(jnp.float32), (H, 1))   # (HS, RD2)
    st = jnp.tile(sin2.astype(jnp.float32), (H, 1))   # (HS, RD2)

    # Block-diagonal causal additive bias over the head-stacked (HS, HS) score tile.
    r = jnp.arange(HS)
    same_head = (r[:, None] // S) == (r[None, :] // S)
    causal = (r[:, None] % S) >= (r[None, :] % S)
    bias = jnp.where(same_head & causal, 0.0, NEG).astype(jnp.float32)

    return dict(w_in=w_in, gq=params["gq"], gkv=params["gkv"], w_qdec=w_qdec,
                w_kvdec=w_kvdec, wo=wo, ct=ct, st=st, bias=bias)


# ------------------------------- forward ------------------------------------
@jax.jit
def mla_forward(x, prep, mask):
    """x: (B, S, D) f32.  `mask` is ignored (reference SDPA uses is_causal=True)."""
    del mask
    args = (x, prep["w_in"], prep["gq"], prep["gkv"], prep["w_qdec"],
            prep["w_kvdec"], prep["wo"], prep["ct"], prep["st"], prep["bias"])
    # x is blocked per batch; everything else is a whole-array block with a constant
    # index map, so it is DMA'd once and stays resident across grid steps.
    const_specs = [pl.BlockSpec(a.shape, lambda b, n=a.ndim: (0,) * n)
                   for a in args[1:]]
    in_specs = [pl.BlockSpec((None, S, D), lambda b: (b, 0, 0))] + const_specs

    # TODO(synk): when scaling S up, add a KV grid axis with flash-style online
    # softmax and set vmem_limit_bytes explicitly — the (H*S)^2 score tile is what
    # hits v7x's smaller (64 MiB) VMEM first.
    out = pl.pallas_call(
        mla_kernel,
        out_shape=jax.ShapeDtypeStruct((B, 1, S * D), jnp.float32),
        grid=(B,),   # batch axis is parallel: v7x's two TensorCores each take one batch
        in_specs=in_specs,
        out_specs=pl.BlockSpec((None, 1, S * D), lambda b: (b, 0, 0)),
        compiler_params=pltpu.CompilerParams(dimension_semantics=("parallel",)),
    )(*args)
    return out.reshape(B, S, D)


# ----------------------- pure-JAX reference (for checking) -------------------
def mla_reference(x, p, cos2, sin2):
    def rms(v, g):
        return v * lax.rsqrt(jnp.mean(v * v, axis=-1, keepdims=True) + EPS) * g

    nq = rms(x @ p["wqc"], p["gq"])
    q_nope = nq @ p["wqn"]
    q_rope = nq @ p["wqr"]
    nkv = rms(x @ p["wkvc"], p["gkv"])
    k_nope = nkv @ p["wkn"]
    value = nkv @ p["wv"]
    k_rope = x @ p["wkr"]

    qn = q_nope.reshape(B, S, H, ND).transpose(0, 2, 1, 3)
    qr = q_rope.reshape(B, S, H, RD).transpose(0, 2, 1, 3)
    kr = k_rope.reshape(B, S, 1, RD).transpose(0, 2, 1, 3)
    kn = k_nope.reshape(B, S, H, ND).transpose(0, 2, 1, 3)
    v = value.reshape(B, S, H, HD).transpose(0, 2, 1, 3)

    def rope(t):  # complex-pair rotation, matching torch view_as_complex * cis
        tp = t.reshape(*t.shape[:-1], RD // 2, 2)
        tr, ti = tp[..., 0], tp[..., 1]
        out = jnp.stack([tr * cos2 - ti * sin2, tr * sin2 + ti * cos2], axis=-1)
        return out.reshape(t.shape)

    q_rot = rope(qr)            # (B, H, S, RD)
    k_rot = rope(kr)            # (B, 1, S, RD)
    # swap exactly as in the torch forward: k_rope, q_rope = apply_rope(q, k)
    k_rope_v, q_rope_v = q_rot, k_rot

    q_rec = jnp.concatenate([qn, jnp.broadcast_to(q_rope_v, (B, H, S, RD))], -1)
    k_rec = jnp.concatenate([kn, k_rope_v], -1)

    scale = 1.0 / math.sqrt(HD)
    s = jnp.einsum("bhqd,bhkd->bhqk", q_rec, k_rec) * scale
    causal = jnp.tril(jnp.ones((S, S), bool))
    s = jnp.where(causal, s, -jnp.inf)
    attn = jax.nn.softmax(s, axis=-1)
    o = jnp.einsum("bhqk,bhkd->bhqd", attn, v)
    o = o.transpose(0, 2, 1, 3).reshape(B, S, H * HD)
    return o @ p["wo"]


# --------------------------------- main ---------------------------------------
if __name__ == "__main__":
    key = jax.random.PRNGKey(0)
    keys = jax.random.split(key, 10)

    def init(k, shape):
        fan_in = shape[0]
        return (jax.random.normal(k, shape, jnp.float32) / math.sqrt(fan_in))

    params = {
        "wqc":  init(keys[0], (D, QLR)),
        "gq":   jnp.ones((1, QLR), jnp.float32),        # RMSNorm weight at init
        "wqn":  init(keys[1], (QLR, H * ND)),
        "wqr":  init(keys[2], (QLR, H * RD)),
        "wkvc": init(keys[3], (D, KVLR)),
        "gkv":  jnp.ones((1, KVLR), jnp.float32),
        "wkn":  init(keys[4], (KVLR, H * ND)),
        "wv":   init(keys[5], (KVLR, H * HD)),
        "wkr":  init(keys[6], (D, RD)),
        "wo":   init(keys[7], (H * HD, D)),
    }

    x = jax.random.normal(keys[8], (B, S, D), jnp.float32)
    mask = jnp.tril(jnp.ones((S, S), jnp.float32))  # unused, mirrors the torch signature

    # freqs_cis (as cos/sin of shape (S, RD//2))
    inv_freq = 1.0 / (10000.0 ** (jnp.arange(0, RD, 2, dtype=jnp.float32) / RD))
    ang = jnp.arange(S, dtype=jnp.float32)[:, None] * inv_freq[None, :]
    cos2, sin2 = jnp.cos(ang), jnp.sin(ang)

    prep = prepare_mla_inputs(params, cos2, sin2)   # one-time layout prep

    out = mla_forward(x, prep, mask)
    out = jax.block_until_ready(out)

    ref = mla_reference(x, params, cos2, sin2)
    ref = jax.block_until_ready(ref)

    assert out.shape == (B, S, D)
    # Tolerance sized for bf16 MXU operands + approx-reciprocal softmax vs the f32
    # reference (precision/perf tradeoff, acknowledged in the review).
    assert jnp.allclose(out, ref, atol=3e-2, rtol=3e-2), (
        f"max abs diff = {float(jnp.max(jnp.abs(out - ref)))}")

    print("KERNEL_OK")
</pallas_src>

<mosaic_0001>
module attributes {stable_mosaic.version = 11 : i64} {
  func.func @mla_kernel(%arg0: i32, %arg1: memref<1x8x32xf32, #tpu.memory_space<vmem>>, %arg2: memref<32x32xbf16, #tpu.memory_space<vmem>>, %arg3: memref<1x16xf32, #tpu.memory_space<vmem>>, %arg4: memref<1x8xf32, #tpu.memory_space<vmem>>, %arg5: memref<16x64xbf16, #tpu.memory_space<vmem>>, %arg6: memref<8x96xbf16, #tpu.memory_space<vmem>>, %arg7: memref<64x32xbf16, #tpu.memory_space<vmem>>, %arg8: memref<32x4xf32, #tpu.memory_space<vmem>>, %arg9: memref<32x4xf32, #tpu.memory_space<vmem>>, %arg10: memref<32x32xf32, #tpu.memory_space<vmem>>, %arg11: memref<1x1x256xf32, #tpu.memory_space<vmem>>) attributes {dimension_semantics = [#tpu.dimension_semantics<parallel>], iteration_bounds = array<i64: 2>, scalar_prefetch = 0 : i64, scratch_operands = 0 : i64, tpu.core_type = #tpu.core_type<tc>, window_params = [{transform_indices = @transform_0, window_bounds = array<i64: 1, 8, 32>}, {pipeline_mode = #tpu.pipeline_mode<synchronous>, transform_indices = @transform_1, window_bounds = array<i64: 32, 32>}, {pipeline_mode = #tpu.pipeline_mode<synchronous>, transform_indices = @transform_2, window_bounds = array<i64: 1, 16>}, {pipeline_mode = #tpu.pipeline_mode<synchronous>, transform_indices = @transform_3, window_bounds = array<i64: 1, 8>}, {pipeline_mode = #tpu.pipeline_mode<synchronous>, transform_indices = @transform_4, window_bounds = array<i64: 16, 64>}, {pipeline_mode = #tpu.pipeline_mode<synchronous>, transform_indices = @transform_5, window_bounds = array<i64: 8, 96>}, {pipeline_mode = #tpu.pipeline_mode<synchronous>, transform_indices = @transform_6, window_bounds = array<i64: 64, 32>}, {pipeline_mode = #tpu.pipeline_mode<synchronous>, transform_indices = @transform_7, window_bounds = array<i64: 32, 4>}, {pipeline_mode = #tpu.pipeline_mode<synchronous>, transform_indices = @transform_8, window_bounds = array<i64: 32, 4>}, {pipeline_mode = #tpu.pipeline_mode<synchronous>, transform_indices = @transform_9, window_bounds = array<i64: 32, 32>}, {transform_indices = @transform_10, window_bounds = array<i64: 1, 1, 256>}]} {
    %c0 = arith.constant 0 : index
    %c0_0 = arith.constant 0 : index
    %0 = vector.load %arg8[%c0, %c0_0] : memref<32x4xf32, #tpu.memory_space<vmem>>, vector<32x4xf32>
    %c0_1 = arith.constant 0 : index
    %c0_2 = arith.constant 0 : index
    %1 = vector.load %arg9[%c0_1, %c0_2] : memref<32x4xf32, #tpu.memory_space<vmem>>, vector<32x4xf32>
    %c0_3 = arith.constant 0 : index
    %c0_4 = arith.constant 0 : index
    %c0_5 = arith.constant 0 : index
    %2 = vector.load %arg1[%c0_3, %c0_4, %c0_5] : memref<1x8x32xf32, #tpu.memory_space<vmem>>, vector<1x8x32xf32>
    %3 = vector.shape_cast %2 : vector<1x8x32xf32> to vector<8x32xf32>
    %c0_6 = arith.constant 0 : index
    %c0_7 = arith.constant 0 : index
    %4 = vector.load %arg2[%c0_6, %c0_7] : memref<32x32xbf16, #tpu.memory_space<vmem>>, vector<32x32xbf16>
    %5 = arith.truncf %3 : vector<8x32xf32> to vector<8x32xbf16>
    %cst = arith.constant dense<0.000000e+00> : vector<8x32xf32>
    %6 = tpu.matmul %5, %4, %cst {dimension_numbers = #tpu.dot_dimension_numbers<[1], [0], [0], [1], [0, 0, 1, 1], [], []>} : vector<8x32xbf16>, vector<32x32xbf16>, vector<8x32xf32> -> vector<8x32xf32>
    %7 = vector.extract_strided_slice %6 {offsets = [0, 0], sizes = [8, 16], strides = [1, 1]} : vector<8x32xf32> to vector<8x16xf32>
    %c0_8 = arith.constant 0 : index
    %c0_9 = arith.constant 0 : index
    %8 = vector.load %arg3[%c0_8, %c0_9] : memref<1x16xf32, #tpu.memory_space<vmem>>, vector<1x16xf32>
    %9 = arith.mulf %7, %7 : vector<8x16xf32>
    %cst_10 = arith.constant dense<0.000000e+00> : vector<8xf32>
    %10 = vector.multi_reduction <add>, %9, %cst_10 [1] : vector<8x16xf32> to vector<8xf32>
    %11 = vector.shape_cast %10 : vector<8xf32> to vector<8x1xf32>
    %cst_11 = arith.constant 1.600000e+01 : f32
    %12 = vector.broadcast %cst_11 : f32 to vector<8x1xf32>
    %13 = arith.divf %11, %12 : vector<8x1xf32>
    %cst_12 = arith.constant 9.99999997E-7 : f32
    %14 = vector.broadcast %cst_12 : f32 to vector<8x1xf32>
    %15 = arith.addf %13, %14 : vector<8x1xf32>
    %16 = math.rsqrt %15 : vector<8x1xf32>
    %17 = vector.broadcast %16 : vector<8x1xf32> to vector<8x16xf32>
    %18 = arith.mulf %7, %17 : vector<8x16xf32>
    %19 = vector.broadcast %8 : vector<1x16xf32> to vector<8x16xf32>
    %20 = arith.mulf %18, %19 : vector<8x16xf32>
    %cst_13 = arith.constant 2.500000e-01 : f32
    %21 = vector.broadcast %cst_13 : f32 to vector<8x16xf32>
    %22 = arith.mulf %20, %21 : vector<8x16xf32>
    %23 = vector.extract_strided_slice %6 {offsets = [0, 16], sizes = [8, 8], strides = [1, 1]} : vector<8x32xf32> to vector<8x8xf32>
    %c0_14 = arith.constant 0 : index
    %c0_15 = arith.constant 0 : index
    %24 = vector.load %arg4[%c0_14, %c0_15] : memref<1x8xf32, #tpu.memory_space<vmem>>, vector<1x8xf32>
    %25 = arith.mulf %23, %23 : vector<8x8xf32>
    %cst_16 = arith.constant dense<0.000000e+00> : vector<8xf32>
    %26 = vector.multi_reduction <add>, %25, %cst_16 [1] : vector<8x8xf32> to vector<8xf32>
    %27 = vector.shape_cast %26 : vector<8xf32> to vector<8x1xf32>
    %cst_17 = arith.constant 8.000000e+00 : f32
    %28 = vector.broadcast %cst_17 : f32 to vector<8x1xf32>
    %29 = arith.divf %27, %28 : vector<8x1xf32>
    %cst_18 = arith.constant 9.99999997E-7 : f32
    %30 = vector.broadcast %cst_18 : f32 to vector<8x1xf32>
    %31 = arith.addf %29, %30 : vector<8x1xf32>
    %32 = math.rsqrt %31 : vector<8x1xf32>
    %33 = vector.broadcast %32 : vector<8x1xf32> to vector<8x8xf32>
    %34 = arith.mulf %23, %33 : vector<8x8xf32>
    %35 = vector.broadcast %24 : vector<1x8xf32> to vector<8x8xf32>
    %36 = arith.mulf %34, %35 : vector<8x8xf32>
    %37 = vector.extract_strided_slice %6 {offsets = [0, 24], sizes = [8, 8], strides = [1, 1]} : vector<8x32xf32> to vector<8x8xf32>
    %38 = vector.extract_strided_slice %0 {offsets = [0, 0], sizes = [8, 4], strides = [1, 1]} : vector<32x4xf32> to vector<8x4xf32>
    %39 = vector.extract_strided_slice %1 {offsets = [0, 0], sizes = [8, 4], strides = [1, 1]} : vector<32x4xf32> to vector<8x4xf32>
    %40 = vector.extract_strided_slice %37 {offsets = [0, 0], sizes = [8, 4], strides = [1, 1]} : vector<8x8xf32> to vector<8x4xf32>
    %41 = vector.extract_strided_slice %37 {offsets = [0, 4], sizes = [8, 4], strides = [1, 1]} : vector<8x8xf32> to vector<8x4xf32>
    %42 = arith.mulf %40, %38 : vector<8x4xf32>
    %43 = arith.mulf %41, %39 : vector<8x4xf32>
    %44 = arith.subf %42, %43 : vector<8x4xf32>
    %45 = arith.mulf %41, %38 : vector<8x4xf32>
    %46 = arith.mulf %40, %39 : vector<8x4xf32>
    %47 = arith.addf %45, %46 : vector<8x4xf32>
    %48 = tpu.concatenate %44, %47 in 1 : vector<8x4xf32>, vector<8x4xf32> -> vector<8x8xf32>
    %c0_19 = arith.constant 0 : index
    %c0_20 = arith.constant 0 : index
    %49 = vector.load %arg5[%c0_19, %c0_20] : memref<16x64xbf16, #tpu.memory_space<vmem>>, vector<16x64xbf16>
    %50 = arith.truncf %22 : vector<8x16xf32> to vector<8x16xbf16>
    %cst_21 = arith.constant dense<0.000000e+00> : vector<8x64xf32>
    %51 = tpu.matmul %50, %49, %cst_21 {dimension_numbers = #tpu.dot_dimension_numbers<[1], [0], [0], [1], [0, 0, 1, 1], [], []>} : vector<8x16xbf16>, vector<16x64xbf16>, vector<8x64xf32> -> vector<8x64xf32>
    %52 = vector.extract_strided_slice %51 {offsets = [0, 0], sizes = [8, 32], strides = [1, 1]} : vector<8x64xf32> to vector<8x32xf32>
    %53 = vector.extract_strided_slice %51 {offsets = [0, 32], sizes = [8, 32], strides = [1, 1]} : vector<8x64xf32> to vector<8x32xf32>
    %c0_22 = arith.constant 0 : index
    %c0_23 = arith.constant 0 : index
    %54 = vector.load %arg6[%c0_22, %c0_23] : memref<8x96xbf16, #tpu.memory_space<vmem>>, vector<8x96xbf16>
    %55 = arith.truncf %36 : vector<8x8xf32> to vector<8x8xbf16>
    %cst_24 = arith.constant dense<0.000000e+00> : vector<8x96xf32>
    %56 = tpu.matmul %55, %54, %cst_24 {dimension_numbers = #tpu.dot_dimension_numbers<[1], [0], [0], [1], [0, 0, 1, 1], [], []>} : vector<8x8xbf16>, vector<8x96xbf16>, vector<8x96xf32> -> vector<8x96xf32>
    %57 = vector.extract_strided_slice %56 {offsets = [0, 0], sizes = [8, 32], strides = [1, 1]} : vector<8x96xf32> to vector<8x32xf32>
    %58 = vector.extract_strided_slice %56 {offsets = [0, 32], sizes = [8, 64], strides = [1, 1]} : vector<8x96xf32> to vector<8x64xf32>
    %59 = vector.extract_strided_slice %52 {offsets = [0, 0], sizes = [8, 8], strides = [1, 1]} : vector<8x32xf32> to vector<8x8xf32>
    %60 = vector.extract_strided_slice %52 {offsets = [0, 8], sizes = [8, 8], strides = [1, 1]} : vector<8x32xf32> to vector<8x8xf32>
    %61 = vector.extract_strided_slice %52 {offsets = [0, 16], sizes = [8, 8], strides = [1, 1]} : vector<8x32xf32> to vector<8x8xf32>
    %62 = vector.extract_strided_slice %52 {offsets = [0, 24], sizes = [8, 8], strides = [1, 1]} : vector<8x32xf32> to vector<8x8xf32>
    %63 = tpu.concatenate %59, %60, %61, %62 in 0 : vector<8x8xf32>, vector<8x8xf32>, vector<8x8xf32>, vector<8x8xf32> -> vector<32x8xf32>
    %64 = vector.extract_strided_slice %57 {offsets = [0, 0], sizes = [8, 8], strides = [1, 1]} : vector<8x32xf32> to vector<8x8xf32>
    %65 = vector.extract_strided_slice %57 {offsets = [0, 8], sizes = [8, 8], strides = [1, 1]} : vector<8x32xf32> to vector<8x8xf32>
    %66 = vector.extract_strided_slice %57 {offsets = [0, 16], sizes = [8, 8], strides = [1, 1]} : vector<8x32xf32> to vector<8x8xf32>
    %67 = vector.extract_strided_slice %57 {offsets = [0, 24], sizes = [8, 8], strides = [1, 1]} : vector<8x32xf32> to vector<8x8xf32>
    %68 = tpu.concatenate %64, %65, %66, %67 in 0 : vector<8x8xf32>, vector<8x8xf32>, vector<8x8xf32>, vector<8x8xf32> -> vector<32x8xf32>
    %69 = vector.extract_strided_slice %58 {offsets = [0, 0], sizes = [8, 16], strides = [1, 1]} : vector<8x64xf32> to vector<8x16xf32>
    %70 = vector.extract_strided_slice %58 {offsets = [0, 16], sizes = [8, 16], strides = [1, 1]} : vector<8x64xf32> to vector<8x16xf32>
    %71 = vector.extract_strided_slice %58 {offsets = [0, 32], sizes = [8, 16], strides = [1, 1]} : vector<8x64xf32> to vector<8x16xf32>
    %72 = vector.extract_strided_slice %58 {offsets = [0, 48], sizes = [8, 16], strides = [1, 1]} : vector<8x64xf32> to vector<8x16xf32>
    %73 = tpu.concatenate %69, %70, %71, %72 in 0 : vector<8x16xf32>, vector<8x16xf32>, vector<8x16xf32>, vector<8x16xf32> -> vector<32x16xf32>
    %74 = vector.extract_strided_slice %53 {offsets = [0, 0], sizes = [8, 8], strides = [1, 1]} : vector<8x32xf32> to vector<8x8xf32>
    %75 = vector.extract_strided_slice %53 {offsets = [0, 8], sizes = [8, 8], strides = [1, 1]} : vector<8x32xf32> to vector<8x8xf32>
    %76 = vector.extract_strided_slice %53 {offsets = [0, 16], sizes = [8, 8], strides = [1, 1]} : vector<8x32xf32> to vector<8x8xf32>
    %77 = vector.extract_strided_slice %53 {offsets = [0, 24], sizes = [8, 8], strides = [1, 1]} : vector<8x32xf32> to vector<8x8xf32>
    %78 = tpu.concatenate %74, %75, %76, %77 in 0 : vector<8x8xf32>, vector<8x8xf32>, vector<8x8xf32>, vector<8x8xf32> -> vector<32x8xf32>
    %79 = vector.extract_strided_slice %78 {offsets = [0, 0], sizes = [32, 4], strides = [1, 1]} : vector<32x8xf32> to vector<32x4xf32>
    %80 = vector.extract_strided_slice %78 {offsets = [0, 4], sizes = [32, 4], strides = [1, 1]} : vector<32x8xf32> to vector<32x4xf32>
    %81 = arith.mulf %79, %0 : vector<32x4xf32>
    %82 = arith.mulf %80, %1 : vector<32x4xf32>
    %83 = arith.subf %81, %82 : vector<32x4xf32>
    %84 = arith.mulf %80, %0 : vector<32x4xf32>
    %85 = arith.mulf %79, %1 : vector<32x4xf32>
    %86 = arith.addf %84, %85 : vector<32x4xf32>
    %87 = tpu.concatenate %83, %86 in 1 : vector<32x4xf32>, vector<32x4xf32> -> vector<32x8xf32>
    %88 = tpu.concatenate %48, %48, %48, %48 in 0 : vector<8x8xf32>, vector<8x8xf32>, vector<8x8xf32>, vector<8x8xf32> -> vector<32x8xf32>
    %89 = tpu.concatenate %63, %88 in 1 : vector<32x8xf32>, vector<32x8xf32> -> vector<32x16xf32>
    %90 = tpu.concatenate %68, %87 in 1 : vector<32x8xf32>, vector<32x8xf32> -> vector<32x16xf32>
    %91 = arith.truncf %89 : vector<32x16xf32> to vector<32x16xbf16>
    %92 = arith.truncf %90 : vector<32x16xf32> to vector<32x16xbf16>
    %cst_25 = arith.constant dense<0.000000e+00> : vector<32x32xf32>
    %93 = tpu.matmul %91, %92, %cst_25 {dimension_numbers = #tpu.dot_dimension_numbers<[1], [1], [0], [0], [0, 0, 1, 0], [], []>} : vector<32x16xbf16>, vector<32x16xbf16>, vector<32x32xf32> -> vector<32x32xf32>
    %c0_26 = arith.constant 0 : index
    %c0_27 = arith.constant 0 : index
    %94 = vector.load %arg10[%c0_26, %c0_27] : memref<32x32xf32, #tpu.memory_space<vmem>>, vector<32x32xf32>
    %95 = arith.addf %93, %94 : vector<32x32xf32>
    %cst_28 = arith.constant dense<0xFF800000> : vector<32xf32>
    %96 = vector.multi_reduction <maximumf>, %95, %cst_28 [1] : vector<32x32xf32> to vector<32xf32>
    %97 = vector.shape_cast %96 : vector<32xf32> to vector<32x1xf32>
    %98 = vector.broadcast %97 : vector<32x1xf32> to vector<32x32xf32>
    %99 = arith.subf %95, %98 : vector<32x32xf32>
    %100 = math.exp %99 : vector<32x32xf32>
    %cst_29 = arith.constant dense<0.000000e+00> : vector<32xf32>
    %101 = vector.multi_reduction <add>, %100, %cst_29 [1] : vector<32x32xf32> to vector<32xf32>
    %102 = vector.shape_cast %101 : vector<32xf32> to vector<32x1xf32>
    %103 = tpu.reciprocal %102 {approx = true} : vector<32x1xf32> -> vector<32x1xf32>
    %104 = vector.broadcast %103 : vector<32x1xf32> to vector<32x32xf32>
    %105 = arith.mulf %100, %104 : vector<32x32xf32>
    %106 = arith.truncf %105 : vector<32x32xf32> to vector<32x32xbf16>
    %107 = arith.truncf %73 : vector<32x16xf32> to vector<32x16xbf16>
    %cst_30 = arith.constant dense<0.000000e+00> : vector<32x16xf32>
    %108 = tpu.matmul %106, %107, %cst_30 {dimension_numbers = #tpu.dot_dimension_numbers<[1], [0], [0], [1], [0, 0, 1, 1], [], []>} : vector<32x32xbf16>, vector<32x16xbf16>, vector<32x16xf32> -> vector<32x16xf32>
    %109 = vector.extract_strided_slice %108 {offsets = [0, 0], sizes = [8, 16], strides = [1, 1]} : vector<32x16xf32> to vector<8x16xf32>
    %110 = vector.extract_strided_slice %108 {offsets = [8, 0], sizes = [8, 16], strides = [1, 1]} : vector<32x16xf32> to vector<8x16xf32>
    %111 = vector.extract_strided_slice %108 {offsets = [16, 0], sizes = [8, 16], strides = [1, 1]} : vector<32x16xf32> to vector<8x16xf32>
    %112 = vector.extract_strided_slice %108 {offsets = [24, 0], sizes = [8, 16], strides = [1, 1]} : vector<32x16xf32> to vector<8x16xf32>
    %113 = tpu.concatenate %109, %110, %111, %112 in 1 : vector<8x16xf32>, vector<8x16xf32>, vector<8x16xf32>, vector<8x16xf32> -> vector<8x64xf32>
    %c0_31 = arith.constant 0 : index
    %c0_32 = arith.constant 0 : index
    %114 = vector.load %arg7[%c0_31, %c0_32] : memref<64x32xbf16, #tpu.memory_space<vmem>>, vector<64x32xbf16>
    %115 = arith.truncf %113 : vector<8x64xf32> to vector<8x64xbf16>
    %cst_33 = arith.constant dense<0.000000e+00> : vector<8x32xf32>
    %116 = tpu.matmul %115, %114, %cst_33 {dimension_numbers = #tpu.dot_dimension_numbers<[1], [0], [0], [1], [0, 0, 1, 1], [], []>} : vector<8x64xbf16>, vector<64x32xbf16>, vector<8x32xf32> -> vector<8x32xf32>
    %117 = vector.extract_strided_slice %116 {offsets = [0, 0], sizes = [1, 32], strides = [1, 1]} : vector<8x32xf32> to vector<1x32xf32>
    %118 = vector.extract_strided_slice %116 {offsets = [1, 0], sizes = [1, 32], strides = [1, 1]} : vector<8x32xf32> to vector<1x32xf32>
    %119 = vector.extract_strided_slice %116 {offsets = [2, 0], sizes = [1, 32], strides = [1, 1]} : vector<8x32xf32> to vector<1x32xf32>
    %120 = vector.extract_strided_slice %116 {offsets = [3, 0], sizes = [1, 32], strides = [1, 1]} : vector<8x32xf32> to vector<1x32xf32>
    %121 = vector.extract_strided_slice %116 {offsets = [4, 0], sizes = [1, 32], strides = [1, 1]} : vector<8x32xf32> to vector<1x32xf32>
    %122 = vector.extract_strided_slice %116 {offsets = [5, 0], sizes = [1, 32], strides = [1, 1]} : vector<8x32xf32> to vector<1x32xf32>
    %123 = vector.extract_strided_slice %116 {offsets = [6, 0], sizes = [1, 32], strides = [1, 1]} : vector<8x32xf32> to vector<1x32xf32>
    %124 = vector.extract_strided_slice %116 {offsets = [7, 0], sizes = [1, 32], strides = [1, 1]} : vector<8x32xf32> to vector<1x32xf32>
    %125 = tpu.concatenate %117, %118, %119, %120, %121, %122, %123, %124 in 1 : vector<1x32xf32>, vector<1x32xf32>, vector<1x32xf32>, vector<1x32xf32>, vector<1x32xf32>, vector<1x32xf32>, vector<1x32xf32>, vector<1x32xf32> -> vector<1x256xf32>
    %c0_34 = arith.constant 0 : index
    %c0_35 = arith.constant 0 : index
    %c0_36 = arith.constant 0 : index
    %126 = vector.load %arg11[%c0_34, %c0_35, %c0_36] : memref<1x1x256xf32, #tpu.memory_space<vmem>>, vector<1x1x256xf32>
    %127 = vector.shape_cast %126 : vector<1x1x256xf32> to vector<1x256xf32>
    %128 = vector.shape_cast %125 : vector<1x256xf32> to vector<1x1x256xf32>
    tpu.vector_store %arg11[%c0_34, %c0_35, %c0_36], %128 {strides = array<i32>} : memref<1x1x256xf32, #tpu.memory_space<vmem>>, vector<1x1x256xf32>,
    return
  }
  func.func @transform_0(%arg0: i32) -> (i32, i32, i32) {
    %c0_i32 = arith.constant 0 : i32
    %c0_i32_0 = arith.constant 0 : i32
    %c0_i32_1 = arith.constant 0 : i32
    return %arg0, %c0_i32, %c0_i32_0 : i32, i32, i32
  }
  func.func @transform_1(%arg0: i32) -> (i32, i32) {
    %c0_i32 = arith.constant 0 : i32
    %c0_i32_0 = arith.constant 0 : i32
    %c0_i32_1 = arith.constant 0 : i32
    return %c0_i32, %c0_i32_0 : i32, i32
  }
  func.func @transform_2(%arg0: i32) -> (i32, i32) {
    %c0_i32 = arith.constant 0 : i32
    %c0_i32_0 = arith.constant 0 : i32
    %c0_i32_1 = arith.constant 0 : i32
    return %c0_i32, %c0_i32_0 : i32, i32
  }
  func.func @transform_3(%arg0: i32) -> (i32, i32) {
    %c0_i32 = arith.constant 0 : i32
    %c0_i32_0 = arith.constant 0 : i32
    %c0_i32_1 = arith.constant 0 : i32
    return %c0_i32, %c0_i32_0 : i32, i32
  }
  func.func @transform_4(%arg0: i32) -> (i32, i32) {
    %c0_i32 = arith.constant 0 : i32
    %c0_i32_0 = arith.constant 0 : i32
    %c0_i32_1 = arith.constant 0 : i32
    return %c0_i32, %c0_i32_0 : i32, i32
  }
  func.func @transform_5(%arg0: i32) -> (i32, i32) {
    %c0_i32 = arith.constant 0 : i32
    %c0_i32_0 = arith.constant 0 : i32
    %c0_i32_1 = arith.constant 0 : i32
    return %c0_i32, %c0_i32_0 : i32, i32
  }
  func.func @transform_6(%arg0: i32) -> (i32, i32) {
    %c0_i32 = arith.constant 0 : i32
    %c0_i32_0 = arith.constant 0 : i32
    %c0_i32_1 = arith.constant 0 : i32
    return %c0_i32, %c0_i32_0 : i32, i32
  }
  func.func @transform_7(%arg0: i32) -> (i32, i32) {
    %c0_i32 = arith.constant 0 : i32
    %c0_i32_0 = arith.constant 0 : i32
    %c0_i32_1 = arith.constant 0 : i32
    return %c0_i32, %c0_i32_0 : i32, i32
  }
  func.func @transform_8(%arg0: i32) -> (i32, i32) {
    %c0_i32 = arith.constant 0 : i32
    %c0_i32_0 = arith.constant 0 : i32
    %c0_i32_1 = arith.constant 0 : i32
    return %c0_i32, %c0_i32_0 : i32, i32
  }
  func.func @transform_9(%arg0: i32) -> (i32, i32) {
    %c0_i32 = arith.constant 0 : i32
    %c0_i32_0 = arith.constant 0 : i32
    %c0_i32_1 = arith.constant 0 : i32
    return %c0_i32, %c0_i32_0 : i32, i32
  }
  func.func @transform_10(%arg0: i32) -> (i32, i32, i32) {
    %c0_i32 = arith.constant 0 : i32
    %c0_i32_0 = arith.constant 0 : i32
    %c0_i32_1 = arith.constant 0 : i32
    return %arg0, %c0_i32, %c0_i32_0 : i32, i32, i32
  }
}

</mosaic_0001>

<bundles_post_ra>
// kernel: mla_forward.1
= control target key start
LH: loop header
LB: loop body
LE: loop exit
PB: predicated region body
PF: predicated region fallthrough
CT: control target
= control target key end

     0   :  { %s1458_s13 = smov 0   ;;  %s1699_s0 = inlined_call_operand.vmem [shape: f32[2,8,32], index: 0, kind: input, shape index: {}]   ;;  %s1700_s1 = inlined_call_operand.vmem [shape: bf16[32,32], index: 1, kind: input, shape index: {}]   ;;  %s1701_s2 = inlined_call_operand.vmem [shape: f32[1,16], index: 2, kind: input, shape index: {}]   ;;  %s1702_s3 = inlined_call_operand.vmem [shape: f32[1,8], index: 3, kind: input, shape index: {}]   ;;  %s1703_s4 = inlined_call_operand.vmem [shape: bf16[16,64], index: 4, kind: input, shape index: {}]   ;;  %s1704_s5 = inlined_call_operand.vmem [shape: bf16[8,96], index: 5, kind: input, shape index: {}]   ;;  %s1705_s6 = inlined_call_operand.vmem [shape: bf16[64,32], index: 6, kind: input, shape index: {}]   ;;  %s1706_s7 = inlined_call_operand.vmem [shape: f32[32,4], index: 7, kind: input, shape index: {}]   ;;  %s1707_s8 = inlined_call_operand.vmem [shape: f32[32,4], index: 8, kind: input, shape index: {}]   ;;  %s1708_s9 = inlined_call_operand.vmem [shape: f32[32,32], index: 9, kind: input, shape index: {}]   ;;  %s1709_s10 = inlined_call_operand.vmem [shape: f32[2,1,256], index: 10, kind: output, shape index: {}]  }
   0x1 LB: > { %s1193_s14 = sadd.s32 4294967295, %s1383_s13   ;;  %p1197_p0 = scmp.ge.s32.totalorder %s1383_s13, 1  ;;  %s1383_s13 = sphi %s1458_s13, %s20_s13  }
   0x2   : > { %p311_p1 = scmp.lt.s32.totalorder %s1383_s13, 3 }
   0x4   : > { %p312_p2 = pnand %p1197_p0, %p311_p1 }
   0x5   : > { %p347_p3 = scmp.lt.s32.totalorder (!%p312_p2), %s1193_s14, 1  ;;  %s1387_s25 = smov (!%p312_p2), 112  }
   0x6   : > { %315 = sbr.rel (%p312_p2) target bundleno = 2240 (0x8c0), region = 60  ;;  %s1388_s30 = smov (!%p312_p2), 16  }
   0x7   : > { %s1389_s15 = smov (!%p312_p2), 36   ;;  %s1390_s16 = smov (!%p312_p2), 32  }
   0x8   : > { %s1391_s21 = smov (!%p312_p2), 104   ;;  %s1392_s27 = smov (!%p312_p2), 120  }
   0x9   : > { %s1393_s28 = smov (!%p312_p2), 28   ;;  %s1394_s12 = smov (!%p312_p2), 24  }
   0xa   : > { %s1395_s24 = smov (!%p312_p2), 124   ;;  %s1397_s26 = smov (!%p312_p2), 96  }
   0xb   : > { %v1350_v0 = vld [vmem:[%s1700_s1 + $0x8] sm:$0xff]   ;;  %v1385_v1 = vmov 0.0   ;;  %v1351_v2 = vld [vmem:[%s1700_s1] sm:$0xff]   ;;  %vm1386_vm0 = vmmov 0   ;;  %s1711_s14 = smov (!%p347_p3, %s1193_s14), 1  ;;  %vm382_vm1 = vcmask 261120  }
   0xc   : > { %1239 = vmatprep.subr.bf16.mxu0 %v1385_v1  ;;  %1253 = vmatprep.subr.bf16.mxu1 %v1385_v1  ;;  %s1198_s19 = sshll.u32 %s1711_s14, 3  ;;  %vm428_vm2 = vcmask 130048   ;;  %v1352_v11 = vld [vmem:[%s1703_s4] sm:$0xff]   ;;  %vm450_vm3 = vcmask 64512   ;;  %v363_v24 = vld [vmem:[%s1707_s8 + $0x18] sm:$0xff]  ;;  %vm566_vm4 = vcmask 1043456  }
   0xd   : > { %1240 = vmatpush3.bf16.msra.mxu0 %v1350_v0  ;;  %1243 = vmatprep.mubr.msk.bf16.mxu0 %vm1386_vm0, %v1385_v1  ;;  %s350_s22 = scalar_lea.vmem %s1699_s0, %s1198_s19  ;;  %v1203_v18 = vld [vmem:[%s1701_s2] ss:$0 sm:$0xff]  ;;  %v362_v35 = vld [vmem:[%s1707_s8 + $0x10] sm:$0xff]  ;;  %v361_v39 = vld [vmem:[%s1707_s8 + $0x8] sm:$0xff]  ;;  %vm504_vm5 = vcmask 31744   ;;  %s1399_s19 = smov 80  }
   0xe   : > { %1241 = vmatprep.subr.bf16.mxu0 %v1385_v1  ;;  %1255 = vmatprep.mubr.msk.bf16.mxu1 %vm1386_vm0, %v1385_v1  ;;  %v364_v3 = vld [vmem:[%s350_s22] sm:$0xff]  ;;  %v358_v42 = vld [vmem:[%s1706_s7 + $0x10] sm:$0xff]  ;;  %v359_v43 = vld [vmem:[%s1706_s7 + $0x18] sm:$0xff]  ;;  %vm1004_vm6 = vcmask 392192   ;;  %vm1039_vm7 = vcmask 523264   ;;  %vm1112_vm8 = vcmask 785408  }
   0xf   : > { %v369_v4 = vpack.c.bf16 %v364_v3, %v364_v3  ;;  %v1204_v20 = vld [vmem:[%s1702_s3] ss:$0 sm:$0xff]  ;;  %v357_v45 = vld [vmem:[%s1706_s7 + $0x8] sm:$0xff] }
  0x10   : > { %v558_v25 = vld [vmem:[%s1704_s5] sm:$0xf] }
  0x11   : > { %1242 = vmatpush3.bf16.msra.mxu0 %v1351_v2  ;;  %v568_v26 = vsel %vm566_vm4, %v558_v25, 0  ;;  %v360_v38 = vld [vmem:[%s1707_s8] sm:$0xff] }
  0x12   : > { %1247 = vmatprep.subr.bf16.mxu0 %v1385_v1  ;;  %1254 = vmatpush3.bf16.msra.mxu1 %v568_v26  ;;  %v356_v44 = vld [vmem:[%s1706_s7] sm:$0xff] }
  0x14   : > { %1244 = vmatmul.mubr.msk.bf16.vlgmr.msra.gmra.mxu0 %vm382_vm1, %v369_v4 }
  0x15   : > { %1249 = vmatprep.mubr.msk.bf16.mxu0 %vm1386_vm0, %v1385_v1  ;;  %1248 = vmatpush3.bf16.msra.mxu0 %v1352_v11 }
  0xd4   : > { %v1489_v5 = vpop.f32.mrf.mxu0 }
  0xd5   : > { %v427_v6 = vmul.f32 %v1489_v5, %v1489_v5 }
  0xd6   : > { %v1245_v7 = vpop.f32.mrf.mxu0 }
  0xd7   : > { %v429_v8 = vsel %vm428_vm2, %v427_v6, 0.0 }
  0xd8   : > { %430 = vadd.xlane.f32.xlu0 %v429_v8  ;;  %v423_v9 = vpop.f32.mrf.mxu0 }
  0xda   : > { %v1246_v10 = vpop.f32.mrf.mxu0 }
  0xee   : > { %447 = vrot.lane.b32.xlu0 %v427_v6, %s1387_s25 }
  0xf2   : > { %664 = vrot.lane.b32.xlu0 %v363_v24, %s1389_s15 }
  0xf6   : > { %716 = vrot.lane.b32.xlu0 %v363_v24, %s1390_s16 }
 0x161   : > { %v431_v12 = vpop.xlane.xlu0 %430 }
 0x162   : > { %v433_v13 = vmul.f32 0.0625, %v431_v12 }
 0x164   : > { %v434_v14 = vadd.f32 1e-06, %v433_v13 }
 0x165   : > { %v448_v15 = vpop.permute.xlu0 %447 }
 0x166   : > { %1357 = vrsqrt.f32 %v434_v14  ;;  %v451_v16 = vsel %vm450_vm3, %v448_v15, 0.0 }
 0x167   : > { %452 = vadd.xlane.f32.xlu1 %v451_v16 }
 0x169   : > { %v665_v48 = vpop.permute.xlu0 %664 }
 0x16d   : > { %v717_v50 = vpop.permute.xlu0 %716 }
 0x173   : > { %v1358_v17 = vpop.eup %1357 }
 0x174   : > { %v436_v19 = vmul.f32 %v1358_v17, %v1489_v5 }
 0x176   : > { %v443_v21 = vmul.f32 %v1203_v18, %v436_v19 }
 0x178   : > { %v444_v22 = vmul.f32 0.25, %v443_v21  ;;  %464 = vrot.lane.b32.xlu1 %v1204_v20, %s1388_s30 }
 0x17a   : > { %v508_v23 = vpack.c.bf16 %v444_v22, %v444_v22 }
 0x17c   : > { %1250 = vmatmul.mubr.msk.bf16.vlgmr.msra.gmra.mxu0 %vm428_vm2, %v508_v23 }
 0x1f0   : > { %v453_v27 = vpop.xlane.xlu1 %452 }
 0x1f1   : > { %v455_v28 = vmul.f32 0.125, %v453_v27 }
 0x1f3   : > { %v456_v29 = vadd.f32 1e-06, %v455_v28 }
 0x1f4   : > { %v465_v31 = vpop.permute.xlu1 %464 }
 0x1f5   : > { %1359 = vrsqrt.f32 %v456_v29 }
 0x202   : > { %v1360_v30 = vpop.eup %1359 }
 0x203   : > { %v458_v32 = vmul.f32 %v1360_v30, %v1489_v5 }
 0x205   : > { %v467_v33 = vmul.f32 %v465_v31, %v458_v32 }
 0x207   : > { %v559_v34 = vpack.c.bf16 %v467_v33, %v467_v33 }
 0x209   : > { %561 = vrot.lane.b32.xlu1 %v559_v34, %s1387_s25 }
 0x20d   : > { %662 = vrot.lane.b32.xlu1 %v362_v35, %s1389_s15 }
 0x211   : > { %714 = vrot.lane.b32.xlu1 %v362_v35, %s1390_s16 }
 0x23c   : > { %v1523_v36 = vpop.f32.mrf.mxu0 }
 0x23d   : > { %617 = vrot.lane.b32.xlu0 %v1523_v36, %s1391_s21  ;;  %614 = vrot.lane.b32.xlu1 %v1523_v36, %s1387_s25 }
 0x23e   : > { %v1251_v37 = vpop.f32.mrf.mxu0 }
 0x240   : > { %v555_v40 = vpop.f32.mrf.mxu0 }
 0x241   : > { %658 = vrot.lane.b32.xlu0 %v360_v38, %s1389_s15  ;;  %660 = vrot.lane.b32.xlu1 %v361_v39, %s1389_s15 }
 0x242   : > { %v1252_v41 = vpop.f32.mrf.mxu0 }
 0x245   : > { %710 = vrot.lane.b32.xlu0 %v360_v38, %s1390_s16  ;;  %611 = vrot.lane.b32.xlu1 %v1523_v36, %s1392_s27 }
 0x249   : > { %474 = vrot.lane.b32.xlu0 %v360_v38, %s1393_s28  ;;  %712 = vrot.lane.b32.xlu1 %v361_v39, %s1390_s16 }
 0x24d   : > { %643 = vrot.lane.b32.xlu0 %v358_v42, %s1390_s16  ;;  %487 = vrot.lane.b32.xlu1 %v360_v38, %s1394_s12 }
 0x251   : > { %698 = vrot.lane.b32.xlu0 %v358_v42, %s1389_s15  ;;  %645 = vrot.lane.b32.xlu1 %v359_v43, %s1390_s16 }
 0x255   : > { %639 = vrot.lane.b32.xlu0 %v356_v44, %s1390_s16  ;;  %700 = vrot.lane.b32.xlu1 %v359_v43, %s1389_s15 }
 0x259   : > { %694 = vrot.lane.b32.xlu0 %v356_v44, %s1389_s15  ;;  %641 = vrot.lane.b32.xlu1 %v357_v45, %s1390_s16 }
 0x25d   : > { %696 = vrot.lane.b32.xlu1 %v357_v45, %s1389_s15  ;;  %s1396_s15 = smov 4  }
 0x27b   : > { %v562_v46 = vpop.permute.xlu1 %561 }
 0x27c   : > { %1256 = vmatmul.mubr.msk.bf16.vlgmr.msra.gmra.mxu1 %vm450_vm3, %v562_v46 }
 0x27f   : > { %v663_v47 = vpop.permute.xlu1 %662 }
 0x283   : > { %v715_v49 = vpop.permute.xlu1 %714 }
 0x2af   : > { %v1564_v51 = vpop.permute.xlu0 %617  ;;  %v1566_v52 = vpop.permute.xlu1 %614 }
 0x2b0   : > { %v673_v53 = vmul.f32 %v665_v48, %v1564_v51  ;;  %v672_v54 = vmul.f32 %v663_v47, %v1566_v52  ;;  %v725_v57 = vmul.f32 %v717_v50, %v1564_v51  ;;  %v724_v58 = vmul.f32 %v715_v49, %v1566_v52 }
 0x2b2   : > { %684 = vrot.lane.b32.xlu1 %v673_v53, %s1395_s24  ;;  %682 = vrot.lane.b32.xlu0 %v672_v54, %s1395_s24 }
 0x2b3   : > { %v659_v55 = vpop.permute.xlu0 %658  ;;  %v661_v56 = vpop.permute.xlu1 %660 }
 0x2b4   : > { %v670_v60 = vmul.f32 %v659_v55, %v1523_v36 }
 0x2b6   : > { %736 = vrot.lane.b32.xlu1 %v725_v57, %s1396_s15  ;;  %734 = vrot.lane.b32.xlu0 %v724_v58, %s1396_s15 }
 0x2b7   : > { %v1572_v59 = vpop.permute.xlu1 %611  ;;  %v711_v62 = vpop.permute.xlu0 %710 }
 0x2b8   : > { %v671_v61 = vmul.f32 %v661_v56, %v1572_v59  ;;  %v722_v0 = vmul.f32 %v711_v62, %v1523_v36 }
 0x2ba   : > { %678 = vrot.lane.b32.xlu0 %v670_v60, %s1395_s24  ;;  %680 = vrot.lane.b32.xlu1 %v671_v61, %s1395_s24 }
 0x2bb   : > { %v713_v63 = vpop.permute.xlu1 %712  ;;  %v475_v3 = vpop.permute.xlu0 %474 }
 0x2bc   : > { %v723_v2 = vmul.f32 %v713_v63, %v1572_v59  ;;  %v477_v6 = vmul.f32 %v475_v3, %v1489_v5 }
 0x2be   : > { %730 = vrot.lane.b32.xlu0 %v722_v0, %s1396_s15  ;;  %732 = vrot.lane.b32.xlu1 %v723_v2, %s1396_s15 }
 0x2bf   : > { %v488_v4 = vpop.permute.xlu1 %487  ;;  %v644_v8 = vpop.permute.xlu0 %643 }
 0x2c0   : > { %v490_v7 = vmul.f32 %v488_v4, %v1489_v5  ;;  %v653_v16 = vmul.f32 %v644_v8, %v1566_v52 }
 0x2c2   : > { %469 = vrot.lane.b32.xlu0 %v356_v44, %s1394_s12  ;;  %483 = vrot.lane.b32.xlu1 %v356_v44, %s1393_s28  ;;  %s1400_s28 = smov 48  }
 0x2c3   : > { %v646_v9 = vpop.permute.xlu1 %645  ;;  %v699_v10 = vpop.permute.xlu0 %698 }
 0x2c4   : > { %v654_v17 = vmul.f32 %v646_v9, %v1564_v51  ;;  %v708_v22 = vmul.f32 %v699_v10, %v1566_v52 }
 0x2c6   : > { %479 = vrot.lane.b32.xlu0 %v477_v6, %s1395_s24  ;;  %492 = vrot.lane.b32.xlu1 %v490_v7, %s1396_s15 }
 0x2c7   : > { %v701_v11 = vpop.permute.xlu1 %700  ;;  %v640_v12 = vpop.permute.xlu0 %639 }
 0x2c8   : > { %v709_v23 = vmul.f32 %v701_v11, %v1564_v51  ;;  %v651_v29 = vmul.f32 %v640_v12, %v1523_v36 }
 0x2cb   : > { %v642_v13 = vpop.permute.xlu1 %641  ;;  %v695_v14 = vpop.permute.xlu0 %694 }
 0x2cc   : > { %v652_v30 = vmul.f32 %v642_v13, %v1572_v59  ;;  %v706_v37 = vmul.f32 %v695_v14, %v1523_v36 }
 0x2cf   : > { %v697_v15 = vpop.permute.xlu1 %696 }
 0x2d0   : > { %v707_v38 = vmul.f32 %v697_v15, %v1572_v59 }
 0x324   : > { %v683_v18 = vpop.permute.xlu0 %682  ;;  %v685_v19 = vpop.permute.xlu1 %684 }
 0x325   : > { %v692_v20 = vsub.f32 %v653_v16, %v683_v18  ;;  %v693_v21 = vsub.f32 %v654_v17, %v685_v19 }
 0x327   : > { %v1315_v24 = vpack.i.bf16 %v693_v21, %v692_v20 }
 0x328   : > { %v735_v25 = vpop.permute.xlu0 %734  ;;  %v737_v26 = vpop.permute.xlu1 %736 }
 0x329   : > { %v744_v27 = vadd.f32 %v735_v25, %v708_v22  ;;  %v745_v28 = vadd.f32 %v737_v26, %v709_v23  ;;  %1316 = vrot.lane.b32.xlu0 %v1315_v24, %s1397_s26 }
 0x32b   : > { %v1320_v31 = vpack.i.bf16 %v745_v28, %v744_v27 }
 0x32c   : > { %v679_v32 = vpop.permute.xlu0 %678  ;;  %v681_v33 = vpop.permute.xlu1 %680 }
 0x32d   : > { %v690_v34 = vsub.f32 %v651_v29, %v679_v32  ;;  %v691_v35 = vsub.f32 %v652_v30, %v681_v33  ;;  %1321 = vrot.lane.b32.xlu1 %v1320_v31, %s1397_s26 }
 0x32f   : > { %v1325_v39 = vpack.i.bf16 %v691_v35, %v690_v34 }
 0x330   : > { %v731_v40 = vpop.permute.xlu0 %730  ;;  %v733_v41 = vpop.permute.xlu1 %732 }
 0x331   : > { %v742_v42 = vadd.f32 %v731_v40, %v706_v37  ;;  %v743_v43 = vadd.f32 %v733_v41, %v707_v38  ;;  %1326 = vrot.lane.b32.xlu0 %v1325_v39, %s1397_s26 }
 0x333   : > { %v1330_v44 = vpack.i.bf16 %v743_v43, %v742_v42 }
 0x334   : > { %v470_v45 = vpop.permute.xlu0 %469  ;;  %v484_v46 = vpop.permute.xlu1 %483 }
 0x335   : > { %1331 = vrot.lane.b32.xlu1 %v1330_v44, %s1397_s26  ;;  %v472_v47 = vmul.f32 %v470_v45, %v1489_v5  ;;  %v486_v48 = vmul.f32 %v484_v46, %v1489_v5 }
 0x338   : > { %v480_v49 = vpop.permute.xlu0 %479  ;;  %v493_v50 = vpop.permute.xlu1 %492 }
 0x339   : > { %v482_v53 = vsub.f32 %v472_v47, %v480_v49  ;;  %v495_v54 = vadd.f32 %v493_v50, %v486_v48  ;;  %v815_v49 = vld [vmem:[%s1708_s9 + $0x8] sm:$0xff] }
 0x33b   : > { %v1335_v55 = vpack.i.bf16 %v495_v54, %v482_v53  ;;  %v817_v53 = vld [vmem:[%s1708_s9 + $0x18] sm:$0xff] }
 0x33c   : > { %v1596_v56 = vpop.f32.mrf.mxu1 }
 0x33d   : > { %624 = vrot.lane.b32.xlu1 %v1596_v56, %s1387_s25  ;;  %1336 = vrot.lane.b32.xlu0 %v1335_v55, %s1391_s21  ;;  %s1398_s25 = smov 8  }
 0x33e   : > { %v1257_v57 = vpop.f32.mrf.mxu1 }
 0x340   : > { %v607_v58 = vpop.f32.mrf.mxu1 }
 0x341   : > { %627 = vrot.lane.b32.xlu0 %v1596_v56, %s1391_s21 }
 0x342   : > { %v1258_v60 = vpop.f32.mrf.mxu1 }
 0x345   : > { %621 = vrot.lane.b32.xlu0 %v1596_v56, %s1392_s27 }
 0x39b   : > { %v1317_v5 = vpop.permute.xlu0 %1316 }
 0x39c   : > { %v1319_v62 = vunpack.i.h.bf16 %v1317_v5  ;;  %v1318_v63 = vunpack.i.l.bf16 %v1317_v5 }
 0x39f   : > { %v1322_v61 = vpop.permute.xlu1 %1321 }
 0x3a0   : > { %v1324_v0 = vunpack.i.h.bf16 %v1322_v61  ;;  %v1323_v2 = vunpack.i.l.bf16 %v1322_v61 }
 0x3a2   : > { %v780_v3 = vsel %vm504_vm5, %v1318_v63, %v1323_v2  ;;  %v781_v4 = vsel %vm504_vm5, %v1319_v62, %v1324_v0 }
 0x3a3   : > { %v1340_v6 = vpack.i.bf16 %v781_v4, %v780_v3  ;;  %v1327_v7 = vpop.permute.xlu0 %1326 }
 0x3a4   : > { %v1329_v9 = vunpack.i.h.bf16 %v1327_v7  ;;  %v1328_v10 = vunpack.i.l.bf16 %v1327_v7 }
 0x3a5   : > { %1341 = vrot.lane.b32.xlu1 %v1340_v6, %s1398_s25 }
 0x3a7   : > { %v1332_v8 = vpop.permute.xlu1 %1331 }
 0x3a8   : > { %v1334_v11 = vunpack.i.h.bf16 %v1332_v8  ;;  %v1333_v12 = vunpack.i.l.bf16 %v1332_v8 }
 0x3aa   : > { %v778_v13 = vsel %vm504_vm5, %v1328_v10, %v1333_v12  ;;  %v779_v14 = vsel %vm504_vm5, %v1329_v9, %v1334_v11 }
 0x3ab   : > { %v1345_v15 = vpack.i.bf16 %v779_v14, %v778_v13 }
 0x3ad   : > { %1346 = vrot.lane.b32.xlu1 %v1345_v15, %s1398_s25 }
 0x3af   : > { %v1337_v16 = vpop.permute.xlu0 %1336  ;;  %v1610_v20 = vpop.permute.xlu1 %624 }
 0x3b0   : > { %v1339_v17 = vunpack.i.h.bf16 %v1337_v16  ;;  %v1338_v18 = vunpack.i.l.bf16 %v1337_v16 }
 0x3b2   : > { %v505_v19 = vsel %vm504_vm5, %v1338_v18, %v1339_v17 }
 0x3b3   : > { %783 = vrot.lane.b32.xlu0 %v505_v19, %s1398_s25  ;;  %v628_v24 = vpop.permute.xlu0 %627 }
 0x3b7   : > { %v622_v32 = vpop.permute.xlu0 %621 }
 0x417   : > { %v1342_v21 = vpop.permute.xlu1 %1341 }
 0x418   : > { %v1344_v22 = vunpack.i.h.bf16 %v1342_v21  ;;  %v1343_v23 = vunpack.i.l.bf16 %v1342_v21 }
 0x41a   : > { %v809_v25 = vsel %vm450_vm3, %v628_v24, %v1344_v22  ;;  %v808_v26 = vsel %vm450_vm3, %v1610_v20, %v1343_v23  ;;  %v925_v22 = vpack.c.bf16 %v1610_v20, %v1596_v56 }
 0x41b   : > { %v813_v27 = vpack.c.bf16 %v809_v25, %v808_v26 }
 0x41d   : > { %1287 = vmatprep.subr.msk.bf16.mxu0 %vm428_vm2, %v813_v27  ;;  %v828_v28 = vsel %vm428_vm2, %v813_v27, 0 }
 0x41e   : > { %1260 = vmatpush3.bf16.xpose.msra.mxu0 %v828_v28 }
 0x41f   : > { %v1347_v29 = vpop.permute.xlu1 %1346 }
 0x420   : > { %v1349_v30 = vunpack.i.h.bf16 %v1347_v29  ;;  %v1348_v31 = vunpack.i.l.bf16 %v1347_v29 }
 0x422   : > { %v807_v33 = vsel %vm450_vm3, %v622_v32, %v1349_v30  ;;  %v806_v34 = vsel %vm450_vm3, %v1596_v56, %v1348_v31 }
 0x423   : > { %v812_v35 = vpack.c.bf16 %v807_v33, %v806_v34 }
 0x425   : > { %v784_v37 = vpop.permute.xlu0 %783  ;;  %1288 = vmatprep.subr.msk.bf16.mxu0 %vm428_vm2, %v812_v35  ;;  %v825_v38 = vsel %vm428_vm2, %v812_v35, 0 }
 0x426   : > { %v786_v39 = vsel %vm450_vm3, %v1523_v36, %v784_v37  ;;  %v787_v40 = vsel %vm450_vm3, %v1572_v59, %v784_v37  ;;  %1262 = vmatpush3.bf16.xpose.msra.mxu0 %v825_v38  ;;  %v788_v42 = vsel %vm450_vm3, %v1566_v52, %v784_v37  ;;  %v789_v43 = vsel %vm450_vm3, %v1564_v51, %v784_v37  ;;  %v816_v36 = vld [vmem:[%s1708_s9 + $0x10] sm:$0xff]  ;;  %v814_v59 = vld [vmem:[%s1708_s9] sm:$0xff]  ;;  %v1353_v38 = vld [vmem:[%s1705_s6 + $0x18] sm:$0xff]  }
 0x427   : > { %v810_v41 = vpack.c.bf16 %v787_v40, %v786_v39  ;;  %v811_v44 = vpack.c.bf16 %v789_v43, %v788_v42  ;;  %v1354_v39 = vld [vmem:[%s1705_s6 + $0x10] sm:$0xff]   ;;  %v1355_v40 = vld [vmem:[%s1705_s6 + $0x8] sm:$0xff]  }
 0x429   : > { %1263 = vmatprep.mubr.msk.bf16.mxu0 %vm428_vm2, %v810_v41  ;;  %v1356_v41 = vld [vmem:[%s1705_s6] sm:$0xff]  }
 0x42d   : > { %1264 = vmatmul.mubr.msk.bf16.vlgmr.msra.gmra.mxu0 %vm428_vm2, %v811_v44 }
 0x4ed   : > { %v1265_v45 = vpop.f32.mrf.mxu0 }
 0x4ee   : > { %v873_v46 = vadd.f32 %v1265_v45, %v816_v36 }
 0x4ef   : > { %v864_v47 = vpop.f32.mrf.mxu0 }
 0x4f0   : > { %v865_v52 = vadd.f32 %v864_v47, %v814_v59  ;;  %v885_v48 = vsel %vm382_vm1, %v873_v46, -inf }
 0x4f1   : > { %886 = vmax.xlane.f32.xlu0 %v885_v48  ;;  %v1266_v51 = vpop.f32.mrf.mxu0 }
 0x4f2   : > { %v879_v50 = vsel %vm382_vm1, %v865_v52, -inf  ;;  %v876_v57 = vadd.f32 %v1266_v51, %v817_v53 }
 0x4f3   : > { %v867_v54 = vpop.f32.mrf.mxu0  ;;  %880 = vmax.xlane.f32.xlu1 %v879_v50 }
 0x4f4   : > { %v868_v55 = vadd.f32 %v867_v54, %v815_v49  ;;  %v888_v60 = vsel %vm382_vm1, %v876_v57, -inf }
 0x4f6   : > { %v882_v58 = vsel %vm382_vm1, %v868_v55, -inf }
 0x4f7   : > { %883 = vmax.xlane.f32.xlu0 %v882_v58 }
 0x4fb   : > { %889 = vmax.xlane.f32.xlu0 %v888_v60 }
 0x504   : > { %630 = vrot.lane.b32.xlu1 %v1596_v56, %s1397_s26 }
 0x511   : > { %633 = vrot.lane.b32.xlu0 %v1596_v56, %s1399_s19 }
 0x57a   : > { %v887_v5 = vpop.xlane.xlu0 %886 }
 0x57b   : > { %v893_v61 = vsub.f32 %v873_v46, %v887_v5 }
 0x57c   : > { %v881_v62 = vpop.xlane.xlu1 %880 }
 0x57d   : > { %v899_v63 = vmul.f32 1.442695, %v893_v61  ;;  %v891_v0 = vsub.f32 %v865_v52, %v881_v62 }
 0x57f   : > { %1361 = vpow2.f32 %v899_v63  ;;  %v895_v2 = vmul.f32 1.442695, %v891_v0  ;;  %v1402_v63 = vmov 1966171168  }
 0x580   : > { %v884_v3 = vpop.xlane.xlu0 %883  ;;  %v631_v19 = vpop.permute.xlu1 %630  ;;  %v1121_v0 = vunpack.c.l.s4 %v1402_v63 }
 0x581   : > { %1363 = vpow2.f32 %v895_v2  ;;  %v892_v4 = vsub.f32 %v868_v55, %v884_v3  ;;  %v1123_v2 = vlaneseq }
 0x583   : > { %v897_v8 = vmul.f32 1.442695, %v892_v4  ;;  %vm1137_vm9 = vcmp.lt.s32.totalorder %v1123_v2, 256 }
 0x584   : > { %v890_v6 = vpop.xlane.xlu0 %889 }
 0x585   : > { %v894_v7 = vsub.f32 %v876_v57, %v890_v6  ;;  %v1122_v6 = vunpack.c.0.s8 %v1121_v0 }
 0x587   : > { %v901_v9 = vmul.f32 1.442695, %v894_v7  ;;  %v1124_v7 = vshrl.u32 %v1123_v2, 7 }
 0x588   : > { %v634_v18 = vpop.permute.xlu0 %633 }
 0x589   : > { %1365 = vpow2.f32 %v901_v9  ;;  %v926_v21 = vpack.c.bf16 %v634_v18, %v631_v19 }
 0x58a   : > { %1367 = vpow2.f32 %v897_v8 }
 0x58c   : > { %v1362_v10 = vpop.eup %1361 }
 0x58d   : > { %v909_v11 = vsel %vm382_vm1, %v1362_v10, 0.0 }
 0x58e   : > { %v1364_v12 = vpop.eup %1363  ;;  %910 = vadd.xlane.f32.xlu1 %v909_v11 }
 0x58f   : > { %v903_v13 = vsel %vm382_vm1, %v1364_v12, 0.0 }
 0x592   : > { %904 = vadd.xlane.f32.xlu1 %v903_v13 }
 0x596   : > { %v1366_v14 = vpop.eup %1365 }
 0x597   : > { %v912_v15 = vsel %vm382_vm1, %v1366_v14, 0.0  ;;  %v1368_v16 = vpop.eup %1367 }
 0x598   : > { %913 = vadd.xlane.f32.xlu0 %v912_v15  ;;  %v906_v17 = vsel %vm382_vm1, %v1368_v16, 0.0 }
 0x59c   : > { %907 = vadd.xlane.f32.xlu0 %v906_v17 }
 0x5a3   : > { %931 = vrot.lane.b32.xlu1 %v926_v21, %s1397_s26 }
 0x5b2   : > { %929 = vrot.lane.b32.xlu0 %v925_v22, %s1397_s26 }
 0x617   : > { %v911_v23 = vpop.xlane.xlu1 %910 }
 0x61b   : > { %v905_v24 = vpop.xlane.xlu1 %904 }
 0x61f   : > { %v932_v25 = vpop.permute.xlu1 %931 }
 0x620   : > { %1267 = vmatprep.subr.bf16.mxu1 %v932_v25 }
 0x621   : > { %v914_v26 = vpop.xlane.xlu0 %913  ;;  %1268 = vmatpush3.bf16.msra.mxu1 %v932_v25 }
 0x622   : > { %1369 = vrcp.f32 %v914_v26 }
 0x623   : > { %1371 = vrcp.f32 %v905_v24 }
 0x624   : > { %1373 = vrcp.f32 %v911_v23 }
 0x625   : > { %v908_v27 = vpop.xlane.xlu0 %907 }
 0x626   : > { %1375 = vrcp.f32 %v908_v27 }
 0x629   : > { %v930_v28 = vpop.permute.xlu0 %929 }
 0x62a   : > { %1269 = vmatprep.subr.bf16.mxu1 %v930_v28 }
 0x62b   : > { %1270 = vmatpush3.bf16.msra.mxu1 %v930_v28 }
 0x62c   : > { %1275 = vmatprep.subr.bf16.mxu1 %v1385_v1 }
 0x62f   : > { %v1370_v29 = vpop.eup %1369 }
 0x630   : > { %v1372_v56 = vpop.eup %1371  ;;  %v922_v31 = vmul.f32 %v1370_v29, %v1366_v14  ;;  %v1125_v14 = vsub.s32 %v1122_v6, %v1124_v7 }
 0x631   : > { %v1374_v20 = vpop.eup %1373  ;;  %v919_v32 = vmul.f32 %v1372_v56, %v1364_v12 }
 0x632   : > { %v921_v34 = vmul.f32 %v1374_v20, %v1362_v10 }
 0x633   : > { %v1376_v30 = vpop.eup %1375 }
 0x634   : > { %v920_v33 = vmul.f32 %v1376_v30, %v1368_v16  ;;  %v924_v37 = vpack.c.bf16 %v922_v31, %v921_v34 }
 0x636   : > { %v923_v35 = vpack.c.bf16 %v920_v33, %v919_v32 }
 0x638   : > { %1271 = vmatprep.mubr.msk.bf16.mxu1 %vm382_vm1, %v923_v35 }
 0x639   : > { %1272 = vmatmul.mubr.msk.bf16.vlgmr.msra.gmra.mxu1 %vm382_vm1, %v924_v37 }
 0x63a   : > { %1283 = vmatprep.mubr.msk.bf16.mxu1 %vm1386_vm0, %v1385_v1  ;;  %1276 = vmatpush3.bf16.msra.mxu1 %v1353_v38 }
 0x63b   : > { %1277 = vmatprep.subr.bf16.mxu1 %v1385_v1 }
 0x63e   : > { %1278 = vmatpush3.bf16.msra.mxu1 %v1354_v39 }
 0x63f   : > { %1279 = vmatprep.subr.bf16.mxu1 %v1385_v1 }
 0x642   : > { %1280 = vmatpush3.bf16.msra.mxu1 %v1355_v40 }
 0x643   : > { %1281 = vmatprep.subr.bf16.mxu1 %v1385_v1 }
 0x646   : > { %1282 = vmatpush3.bf16.msra.mxu1 %v1356_v41 }
 0x6f9   : > { %v1273_v42 = vpop.f32.mrf.mxu1 }
 0x6fa   : > { %995 = vrot.lane.b32.xlu1 %v1273_v42, %s1390_s16 }
 0x6fb   : > { %v975_v43 = vpop.f32.mrf.mxu1 }
 0x6fd   : > { %v1274_v44 = vpop.f32.mrf.mxu1 }
 0x6ff   : > { %v978_v36 = vpop.f32.mrf.mxu1 }
 0x700   : > { %991 = vrot.lane.b32.xlu1 %v978_v36, %s1388_s30  ;;  %s1401_s30 = smov 64  }
 0x704   : > { %999 = vrot.lane.b32.xlu1 %v1274_v44, %s1400_s28 }
 0x76c   : > { %v996_v45 = vpop.permute.xlu1 %995 }
 0x772   : > { %v992_v59 = vpop.permute.xlu1 %991 }
 0x773   : > { %v1002_v46 = vsel %vm428_vm2, %v975_v43, %v992_v59 }
 0x774   : > { %v1003_v1 = vsel %vm382_vm1, %v1002_v46, %v996_v45 }
 0x776   : > { %v1000_v47 = vpop.permute.xlu1 %999 }
 0x777   : > { %v1005_v52 = vsel %vm1004_vm6, %v1003_v1, %v1000_v47 }
 0x778   : > { %v1014_v48 = vpack.c.bf16 %v1005_v52, %v1005_v52 }
 0x77a   : > { %1284 = vmatmul.mubr.msk.bf16.vlgmr.msra.gmra.mxu1 %vm1039_vm7, %v1014_v48 }
 0x83a   : > { %v1077_v51 = vpop.f32.mrf.mxu1 }
 0x83b   : > { %v1098_v49 = vrot.slane %v1077_v51, 5  ;;  %v1084_v50 = vrot.slane %v1077_v51, 1  ;;  %v1102_v55 = vrot.slane %v1077_v51, 6  ;;  %v1088_v57 = vrot.slane %v1077_v51, 2 }
 0x83c   : > { %v1285_v53 = vpop.f32.mrf.mxu1  ;;  %v1106_v60 = vrot.slane %v1077_v51, 7  ;;  %v1092_v5 = vrot.slane %v1077_v51, 3  ;;  %v1096_v8 = vrot.slane %v1077_v51, 4 }
 0x83d   : > { %1099 = vrot.lane.b32.xlu1 %v1098_v49, %s1390_s16  ;;  %1085 = vrot.lane.b32.xlu0 %v1084_v50, %s1390_s16  ;;  %s1199_s16 = sshll.u32 %s1711_s14, 1 }
 0x83e   : > { %v1080_v54 = vpop.f32.mrf.mxu1  ;;  %s354_s11 = scalar_lea.vmem %s1709_s10, %s1199_s16 }
 0x840   : > { %v1286_v58 = vpop.f32.mrf.mxu1 }
 0x841   : > { %1103 = vrot.lane.b32.xlu1 %v1102_v55, %s1401_s30  ;;  %1089 = vrot.lane.b32.xlu0 %v1088_v57, %s1401_s30 }
 0x845   : > { %1107 = vrot.lane.b32.xlu1 %v1106_v60, %s1397_s26  ;;  %1093 = vrot.lane.b32.xlu0 %v1092_v5, %s1397_s26 }
 0x8af   : > { %v1100_v61 = vpop.permute.xlu1 %1099  ;;  %v1086_v62 = vpop.permute.xlu0 %1085 }
 0x8b0   : > { %v1114_v9 = vsel %vm382_vm1, %v1096_v8, %v1100_v61  ;;  %v1110_v10 = vsel %vm382_vm1, %v1077_v51, %v1086_v62 }
 0x8b3   : > { %v1104_v3 = vpop.permute.xlu1 %1103  ;;  %v1090_v4 = vpop.permute.xlu0 %1089 }
 0x8b4   : > { %v1115_v11 = vsel %vm1039_vm7, %v1114_v9, %v1104_v3  ;;  %v1111_v12 = vsel %vm1039_vm7, %v1110_v10, %v1090_v4 }
 0x8b7   : > { %v1108_v13 = vpop.permute.xlu1 %1107  ;;  %v1094_v15 = vpop.permute.xlu0 %1093 }
 0x8b8   : > { %v1116_v16 = vsel %vm1112_vm8, %v1115_v11, %v1108_v13  ;;  %v1113_v17 = vsel %vm1112_vm8, %v1111_v12, %v1094_v15 }
 0x8b9   : > { %v1119_v18 = vcombine.low %v1113_v17, %v1116_v16 }
 0x8bb   : > { %v1126_v19 = vrot.slane %v1119_v18, %v1125_v14 }
 0x8bd   : > { %v1133_v21 = vrot.slane %v1126_v19, %v1125_v14 }
 0x8bf   : > { %1139 = vst.msk [vmem:[%s354_s11] sm:$0x3] %vm1137_vm9, %v1133_v21 }
 0x8c0 PF: > { %s20_s13 = sadd.s32 1, %s1383_s13  }
 0x8c1   : > { %p17_p4 = scmp.ge.s32.totalorder %s20_s13, 4  }
 0x8c3   :  { %19 = sbr.rel (!%p17_p4) target bundleno = 1 (0x1), region = 90 }

</bundles_post_ra>
